<compile_context>
chip_gen: v6e
topology: v6e:2x2x1
jax: 0.10.0
libtpu: 0.0.40
codegen_flags: <defaults>
</compile_context>

<pallas_src>
import jax
import jax.numpy as jnp
from jax.experimental import pallas as pl
from jax.experimental.pallas import tpu as pltpu

STATE_DIM = 17
ACTION_DIM = 7
HIDDEN = 16
MAX_TILE_B = 32768  # batch rows (lane axis) per grid step; see VMEM math above


def critic_kernel(s_ref, a_ref,
                  w1s_ref, w1a_ref, b1_ref,
                  w2_ref, b2_ref,
                  w3_ref, b3_ref,
                  q_ref):
    # Feature-major: activations are (features, TILE_B), lane-dense.
    s = s_ref[...]                       # (STATE_DIM,  TILE_B)
    a = a_ref[...]                       # (ACTION_DIM, TILE_B)

    # fc1 on concat([state, action], 1), expressed as a split-weight matmul.
    # MXU accumulates in f32; bias-add / ReLU stay f32 on the VPU.
    h1 = (jnp.dot(w1s_ref[...], s, preferred_element_type=jnp.float32)
          + jnp.dot(w1a_ref[...], a, preferred_element_type=jnp.float32)
          + b1_ref[...])                 # (HIDDEN, TILE_B) f32
    h1 = jnp.maximum(h1, 0.0)

    # fc2
    h2 = (jnp.dot(w2_ref[...], h1, preferred_element_type=jnp.float32)
          + b2_ref[...])                 # (HIDDEN, TILE_B) f32
    h2 = jnp.maximum(h2, 0.0)

    # fc3 (no activation): (1, HIDDEN) @ (HIDDEN, TILE_B) -> lane-dense (1, TILE_B).
    q = (jnp.dot(w3_ref[...], h2, preferred_element_type=jnp.float32)
         + b3_ref[...])                  # (1, TILE_B) f32
    q_ref[...] = q.astype(q_ref.dtype)


def _choose_tile(B, max_tile_b):
    """Pick the lane-axis (batch) tile size."""
    cap = max(128, (max_tile_b // 128) * 128)
    if B % 128 != 0 or B <= 128:
        # Batch isn't lane-aligned (or is tiny): a single full-batch tile is
        # legal (block dim == full array dim).  If it exceeds the cap, use the
        # 128-aligned cap and let Pallas clip the partial tail tile.
        return B if B <= cap else cap
    # Lane-aligned batch: multiple-of-128 tiles, targeting >= 2 grid steps so
    # the "parallel" batch axis can split across v7x's two TensorCores.
    half = ((B // 2) // 128) * 128
    return max(128, min(cap, half))


def critic_forward(state, action, params,
                   *, compute_dtype=jnp.bfloat16, max_tile_b=MAX_TILE_B):
    """state: (B, STATE_DIM), action: (B, ACTION_DIM) -> (B, 1) f32."""
    B = state.shape[0]
    w1, b1, w2, b2, w3, b3 = params      # PyTorch layout: W (out, in), b (out,)

    # Cast streamed tensors + weights (halves HBM bytes at bf16).  The
    # transposes fuse with the casts in XLA, so this costs the same HBM
    # traffic as the plain cast the previous version already performed.
    s_t = state.T.astype(compute_dtype)                 # (STATE_DIM, B)
    a_t = action.T.astype(compute_dtype)                # (ACTION_DIM, B)
    w1s = w1[:, :STATE_DIM].astype(compute_dtype)       # (HIDDEN, STATE_DIM)
    w1a = w1[:, STATE_DIM:].astype(compute_dtype)       # (HIDDEN, ACTION_DIM)
    w2c = w2.astype(compute_dtype)                      # (HIDDEN, HIDDEN)
    w3c = w3.astype(compute_dtype)                      # (1, HIDDEN)
    b1c = b1.reshape(HIDDEN, 1).astype(jnp.float32)     # biases stay f32
    b2c = b2.reshape(HIDDEN, 1).astype(jnp.float32)
    b3c = b3.reshape(1, 1).astype(jnp.float32)

    tile_b = _choose_tile(B, max_tile_b)
    grid = (pl.cdiv(B, tile_b),)

    def stream_spec(feat):
        # Batch-tiled, feature-major input stream.
        return pl.BlockSpec((feat, tile_b), lambda i: (0, i))

    def const_spec(shape):
        # Weights/biases: same block every grid step -> stay resident in VMEM.
        return pl.BlockSpec(shape, lambda i: (0, 0))

    itm = jnp.dtype(compute_dtype).itemsize
    weight_bytes = (HIDDEN * (STATE_DIM + ACTION_DIM + HIDDEN + 1)) * itm \
        + (2 * HIDDEN + 1) * 4
    cost = pl.CostEstimate(
        flops=2 * B * ((STATE_DIM + ACTION_DIM) * HIDDEN
                       + HIDDEN * HIDDEN + HIDDEN),
        transcendentals=0,
        bytes_accessed=B * (STATE_DIM + ACTION_DIM) * itm   # streamed inputs
        + B * 4                                             # f32 output
        + weight_bytes,                                     # weights + biases
    )

    q_t = pl.pallas_call(
        critic_kernel,
        out_shape=jax.ShapeDtypeStruct((1, B), jnp.float32),
        grid=grid,
        in_specs=[
            stream_spec(STATE_DIM),              # state^T
            stream_spec(ACTION_DIM),             # action^T
            const_spec((HIDDEN, STATE_DIM)),     # W1[:, :state_dim]
            const_spec((HIDDEN, ACTION_DIM)),    # W1[:, state_dim:]
            const_spec((HIDDEN, 1)),             # b1
            const_spec((HIDDEN, HIDDEN)),        # W2
            const_spec((HIDDEN, 1)),             # b2
            const_spec((1, HIDDEN)),             # W3
            const_spec((1, 1)),                  # b3
        ],
        out_specs=pl.BlockSpec((1, tile_b), lambda i: (0, i)),  # lane-dense
        compiler_params=pltpu.CompilerParams(
            dimension_semantics=("parallel",),   # lets v7x split the batch grid
            vmem_limit_bytes=32 * 1024 * 1024,   # explicit; fits v5e/v6e/v7x
        ),
        cost_estimate=cost,
    )(s_t, a_t, w1s, w1a, b1c, w2c, b2c, w3c, b3c)

    # (1, B) row-major -> (B, 1): identical linear order, free reshape.
    return q_t.reshape(B, 1)


def init_params(key):
    """PyTorch-style nn.Linear init: W ~ U(+-1/sqrt(fan_in)), shape (out, in)."""
    def linear(k, fan_in, fan_out):
        kw, kb = jax.random.split(k)
        bound = 1.0 / jnp.sqrt(float(fan_in))
        w = jax.random.uniform(kw, (fan_out, fan_in), jnp.float32, -bound, bound)
        b = jax.random.uniform(kb, (fan_out,), jnp.float32, -bound, bound)
        return w, b

    k1, k2, k3 = jax.random.split(key, 3)
    w1, b1 = linear(k1, STATE_DIM + ACTION_DIM, HIDDEN)   # fc1
    w2, b2 = linear(k2, HIDDEN, HIDDEN)                   # fc2
    w3, b3 = linear(k3, HIDDEN, 1)                        # fc3
    return (w1, b1, w2, b2, w3, b3)


def critic_reference(state, action, params):
    """Pure-JAX reference matching the PyTorch forward exactly."""
    w1, b1, w2, b2, w3, b3 = params
    x = jnp.concatenate([state, action], axis=1)
    h1 = jnp.maximum(x @ w1.T + b1, 0.0)
    h2 = jnp.maximum(h1 @ w2.T + b2, 0.0)
    return h2 @ w3.T + b3


if __name__ == "__main__":
    key = jax.random.PRNGKey(0)
    kp, ks, ka = jax.random.split(key, 3)

    params = init_params(kp)

    # --- check 1: small batch, single tile, f32 path (tight tolerance) ---
    B = 8
    state = jax.random.normal(ks, (B, STATE_DIM), jnp.float32)
    action = jax.random.normal(ka, (B, ACTION_DIM), jnp.float32)
    q_ref = critic_reference(state, action, params)

    q_f32 = jax.block_until_ready(
        critic_forward(state, action, params, compute_dtype=jnp.float32))
    assert q_f32.shape == (B, 1)
    assert jnp.allclose(q_f32, q_ref, atol=1e-5, rtol=1e-5)

    # --- check 2: default bf16 streaming path (loose tolerance) ---
    q_bf16 = jax.block_until_ready(critic_forward(state, action, params))
    assert q_bf16.shape == (B, 1)
    assert jnp.allclose(q_bf16, q_ref, atol=5e-2, rtol=5e-2)

    # --- check 3: multi-tile grid with a partial tail block on the lane axis ---
    B2 = 200
    ks2, ka2 = jax.random.split(jax.random.PRNGKey(1))
    state2 = jax.random.normal(ks2, (B2, STATE_DIM), jnp.float32)
    action2 = jax.random.normal(ka2, (B2, ACTION_DIM), jnp.float32)
    q2 = jax.block_until_ready(
        critic_forward(state2, action2, params,
                       compute_dtype=jnp.float32, max_tile_b=128))
    q2_ref = critic_reference(state2, action2, params)
    assert q2.shape == (B2, 1)
    assert jnp.allclose(q2, q2_ref, atol=1e-5, rtol=1e-5)

    # --- check 4: lane-aligned batch splits into >=2 tiles (megacore path) ---
    B3 = 256
    ks3, ka3 = jax.random.split(jax.random.PRNGKey(2))
    state3 = jax.random.normal(ks3, (B3, STATE_DIM), jnp.float32)
    action3 = jax.random.normal(ka3, (B3, ACTION_DIM), jnp.float32)
    q3 = jax.block_until_ready(
        critic_forward(state3, action3, params, compute_dtype=jnp.float32))
    q3_ref = critic_reference(state3, action3, params)
    assert q3.shape == (B3, 1)
    assert jnp.allclose(q3, q3_ref, atol=1e-5, rtol=1e-5)

    print("KERNEL_OK")
</pallas_src>

<mosaic_0001>
module attributes {stable_mosaic.version = 11 : i64} {
  func.func @critic_kernel(%arg0: i32, %arg1: memref<17x8xf32, #tpu.memory_space<vmem>>, %arg2: memref<7x8xf32, #tpu.memory_space<vmem>>, %arg3: memref<16x17xf32, #tpu.memory_space<vmem>>, %arg4: memref<16x7xf32, #tpu.memory_space<vmem>>, %arg5: memref<16x1xf32, #tpu.memory_space<vmem>>, %arg6: memref<16x16xf32, #tpu.memory_space<vmem>>, %arg7: memref<16x1xf32, #tpu.memory_space<vmem>>, %arg8: memref<1x16xf32, #tpu.memory_space<vmem>>, %arg9: memref<1x1xf32, #tpu.memory_space<vmem>>, %arg10: memref<1x8xf32, #tpu.memory_space<vmem>>) attributes {dimension_semantics = [#tpu.dimension_semantics<parallel>], iteration_bounds = array<i64: 1>, scalar_prefetch = 0 : i64, scratch_operands = 0 : i64, tpu.core_type = #tpu.core_type<tc>, window_params = [{transform_indices = @transform_0, window_bounds = array<i64: 17, 8>}, {transform_indices = @transform_1, window_bounds = array<i64: 7, 8>}, {pipeline_mode = #tpu.pipeline_mode<synchronous>, transform_indices = @transform_2, window_bounds = array<i64: 16, 17>}, {pipeline_mode = #tpu.pipeline_mode<synchronous>, transform_indices = @transform_3, window_bounds = array<i64: 16, 7>}, {pipeline_mode = #tpu.pipeline_mode<synchronous>, transform_indices = @transform_4, window_bounds = array<i64: 16, 1>}, {pipeline_mode = #tpu.pipeline_mode<synchronous>, transform_indices = @transform_5, window_bounds = array<i64: 16, 16>}, {pipeline_mode = #tpu.pipeline_mode<synchronous>, transform_indices = @transform_6, window_bounds = array<i64: 16, 1>}, {pipeline_mode = #tpu.pipeline_mode<synchronous>, transform_indices = @transform_7, window_bounds = array<i64: 1, 16>}, {pipeline_mode = #tpu.pipeline_mode<synchronous>, transform_indices = @transform_8, window_bounds = array<i64: 1, 1>}, {transform_indices = @transform_9, window_bounds = array<i64: 1, 8>}]} {
    %c0 = arith.constant 0 : index
    %c0_0 = arith.constant 0 : index
    %0 = vector.load %arg1[%c0, %c0_0] : memref<17x8xf32, #tpu.memory_space<vmem>>, vector<17x8xf32>
    %c0_1 = arith.constant 0 : index
    %c0_2 = arith.constant 0 : index
    %1 = vector.load %arg2[%c0_1, %c0_2] : memref<7x8xf32, #tpu.memory_space<vmem>>, vector<7x8xf32>
    %c0_3 = arith.constant 0 : index
    %c0_4 = arith.constant 0 : index
    %2 = vector.load %arg3[%c0_3, %c0_4] : memref<16x17xf32, #tpu.memory_space<vmem>>, vector<16x17xf32>
    %cst = arith.constant dense<0.000000e+00> : vector<16x8xf32>
    %3 = tpu.matmul %2, %0, %cst {dimension_numbers = #tpu.dot_dimension_numbers<[1], [0], [0], [1], [0, 0, 1, 1], [], []>} : vector<16x17xf32>, vector<17x8xf32>, vector<16x8xf32> -> vector<16x8xf32>
    %c0_5 = arith.constant 0 : index
    %c0_6 = arith.constant 0 : index
    %4 = vector.load %arg4[%c0_5, %c0_6] : memref<16x7xf32, #tpu.memory_space<vmem>>, vector<16x7xf32>
    %cst_7 = arith.constant dense<0.000000e+00> : vector<16x8xf32>
    %5 = tpu.matmul %4, %1, %cst_7 {dimension_numbers = #tpu.dot_dimension_numbers<[1], [0], [0], [1], [0, 0, 1, 1], [], []>} : vector<16x7xf32>, vector<7x8xf32>, vector<16x8xf32> -> vector<16x8xf32>
    %6 = arith.addf %3, %5 : vector<16x8xf32>
    %c0_8 = arith.constant 0 : index
    %c0_9 = arith.constant 0 : index
    %7 = vector.load %arg5[%c0_8, %c0_9] : memref<16x1xf32, #tpu.memory_space<vmem>>, vector<16x1xf32>
    %8 = vector.broadcast %7 : vector<16x1xf32> to vector<16x8xf32>
    %9 = arith.addf %6, %8 : vector<16x8xf32>
    %cst_10 = arith.constant 0.000000e+00 : f32
    %10 = vector.broadcast %cst_10 : f32 to vector<16x8xf32>
    %11 = arith.maximumf %9, %10 : vector<16x8xf32>
    %c0_11 = arith.constant 0 : index
    %c0_12 = arith.constant 0 : index
    %12 = vector.load %arg6[%c0_11, %c0_12] : memref<16x16xf32, #tpu.memory_space<vmem>>, vector<16x16xf32>
    %cst_13 = arith.constant dense<0.000000e+00> : vector<16x8xf32>
    %13 = tpu.matmul %12, %11, %cst_13 {dimension_numbers = #tpu.dot_dimension_numbers<[1], [0], [0], [1], [0, 0, 1, 1], [], []>} : vector<16x16xf32>, vector<16x8xf32>, vector<16x8xf32> -> vector<16x8xf32>
    %c0_14 = arith.constant 0 : index
    %c0_15 = arith.constant 0 : index
    %14 = vector.load %arg7[%c0_14, %c0_15] : memref<16x1xf32, #tpu.memory_space<vmem>>, vector<16x1xf32>
    %15 = vector.broadcast %14 : vector<16x1xf32> to vector<16x8xf32>
    %16 = arith.addf %13, %15 : vector<16x8xf32>
    %cst_16 = arith.constant 0.000000e+00 : f32
    %17 = vector.broadcast %cst_16 : f32 to vector<16x8xf32>
    %18 = arith.maximumf %16, %17 : vector<16x8xf32>
    %c0_17 = arith.constant 0 : index
    %c0_18 = arith.constant 0 : index
    %19 = vector.load %arg8[%c0_17, %c0_18] : memref<1x16xf32, #tpu.memory_space<vmem>>, vector<1x16xf32>
    %cst_19 = arith.constant dense<0.000000e+00> : vector<1x8xf32>
    %20 = tpu.matmul %19, %18, %cst_19 {dimension_numbers = #tpu.dot_dimension_numbers<[1], [0], [0], [1], [0, 0, 1, 1], [], []>} : vector<1x16xf32>, vector<16x8xf32>, vector<1x8xf32> -> vector<1x8xf32>
    %c0_20 = arith.constant 0 : index
    %c0_21 = arith.constant 0 : index
    %21 = vector.load %arg9[%c0_20, %c0_21] : memref<1x1xf32, #tpu.memory_space<vmem>>, vector<1x1xf32>
    %22 = vector.broadcast %21 : vector<1x1xf32> to vector<1x8xf32>
    %23 = arith.addf %20, %22 : vector<1x8xf32>
    %c0_22 = arith.constant 0 : index
    %c0_23 = arith.constant 0 : index
    %24 = vector.load %arg10[%c0_22, %c0_23] : memref<1x8xf32, #tpu.memory_space<vmem>>, vector<1x8xf32>
    tpu.vector_store %arg10[%c0_22, %c0_23], %23 {strides = array<i32>} : memref<1x8xf32, #tpu.memory_space<vmem>>, vector<1x8xf32>,
    return
  }
  func.func @transform_0(%arg0: i32) -> (i32, i32) {
    %c0_i32 = arith.constant 0 : i32
    %c0_i32_0 = arith.constant 0 : i32
    return %c0_i32, %arg0 : i32, i32
  }
  func.func @transform_1(%arg0: i32) -> (i32, i32) {
    %c0_i32 = arith.constant 0 : i32
    %c0_i32_0 = arith.constant 0 : i32
    return %c0_i32, %arg0 : i32, i32
  }
  func.func @transform_2(%arg0: i32) -> (i32, i32) {
    %c0_i32 = arith.constant 0 : i32
    %c0_i32_0 = arith.constant 0 : i32
    %c0_i32_1 = arith.constant 0 : i32
    return %c0_i32, %c0_i32_0 : i32, i32
  }
  func.func @transform_3(%arg0: i32) -> (i32, i32) {
    %c0_i32 = arith.constant 0 : i32
    %c0_i32_0 = arith.constant 0 : i32
    %c0_i32_1 = arith.constant 0 : i32
    return %c0_i32, %c0_i32_0 : i32, i32
  }
  func.func @transform_4(%arg0: i32) -> (i32, i32) {
    %c0_i32 = arith.constant 0 : i32
    %c0_i32_0 = arith.constant 0 : i32
    %c0_i32_1 = arith.constant 0 : i32
    return %c0_i32, %c0_i32_0 : i32, i32
  }
  func.func @transform_5(%arg0: i32) -> (i32, i32) {
    %c0_i32 = arith.constant 0 : i32
    %c0_i32_0 = arith.constant 0 : i32
    %c0_i32_1 = arith.constant 0 : i32
    return %c0_i32, %c0_i32_0 : i32, i32
  }
  func.func @transform_6(%arg0: i32) -> (i32, i32) {
    %c0_i32 = arith.constant 0 : i32
    %c0_i32_0 = arith.constant 0 : i32
    %c0_i32_1 = arith.constant 0 : i32
    return %c0_i32, %c0_i32_0 : i32, i32
  }
  func.func @transform_7(%arg0: i32) -> (i32, i32) {
    %c0_i32 = arith.constant 0 : i32
    %c0_i32_0 = arith.constant 0 : i32
    %c0_i32_1 = arith.constant 0 : i32
    return %c0_i32, %c0_i32_0 : i32, i32
  }
  func.func @transform_8(%arg0: i32) -> (i32, i32) {
    %c0_i32 = arith.constant 0 : i32
    %c0_i32_0 = arith.constant 0 : i32
    %c0_i32_1 = arith.constant 0 : i32
    return %c0_i32, %c0_i32_0 : i32, i32
  }
  func.func @transform_9(%arg0: i32) -> (i32, i32) {
    %c0_i32 = arith.constant 0 : i32
    %c0_i32_0 = arith.constant 0 : i32
    return %c0_i32, %arg0 : i32, i32
  }
}

</mosaic_0001>

<bundles_post_ra>
// kernel: tpu_custom_call.1
= control target key start
LH: loop header
LB: loop body
LE: loop exit
PB: predicated region body
PF: predicated region fallthrough
CT: control target
= control target key end

     0   :  { %s619_s0 = inlined_call_operand.vmem [shape: f32[17,8], index: 0, kind: input, shape index: {}]   ;;  %s620_s1 = inlined_call_operand.vmem [shape: f32[7,8], index: 1, kind: input, shape index: {}]   ;;  %s621_s2 = inlined_call_operand.vmem [shape: f32[16,17], index: 2, kind: input, shape index: {}]   ;;  %s622_s3 = inlined_call_operand.vmem [shape: f32[16,7], index: 3, kind: input, shape index: {}]   ;;  %s623_s4 = inlined_call_operand.vmem [shape: f32[16,1], index: 4, kind: input, shape index: {}]   ;;  %s624_s5 = inlined_call_operand.vmem [shape: f32[16,16], index: 5, kind: input, shape index: {}]   ;;  %s625_s6 = inlined_call_operand.vmem [shape: f32[16,1], index: 6, kind: input, shape index: {}]   ;;  %s626_s7 = inlined_call_operand.vmem [shape: f32[1,16], index: 7, kind: input, shape index: {}]   ;;  %s627_s8 = inlined_call_operand.<no memory space> [shape: f32[1,1], index: 8, kind: input, shape index: {}]   ;;  %s628_s9 = inlined_call_operand.hbm [shape: f32[1,8], index: 9, kind: output, shape index: {}]  }
   0x1   :  { %v14_v0 = vstv %s627_s8 }
   0x2   :  { %15 = vst [vmem:[#allocation2] sm:$0x1] %v14_v0 }
   0x3   :  { %v38_v1 = vld [vmem:[%s620_s1] sm:$0x7f]  ;;  %vm50_vm0 = vcmask 1046528   ;;  %vm43_vm1 = vcmask 56320   ;;  %v42_v3 = vld [vmem:[%s622_s3 + $0x8] sm:$0xff]  ;;  %vm136_vm2 = vcmask 1040384  }
   0x4   :  { %v41_v2 = vld [vmem:[%s622_s3] sm:$0xff]  ;;  %453 = vmatprep.subr.msk.mxu1 %vm50_vm0, %v38_v1  ;;  %v37_v4 = vld [vmem:[%s619_s0 + $0x10] sm:$0x1]  ;;  %vm129_vm3 = vcmask 138240   ;;  %v36_v5 = vld [vmem:[%s619_s0 + $0x8] sm:$0xff] }
   0x5   :  { %455 = vmatprep.mubr.msk.f32.mxu1 %vm43_vm1, %v41_v2  ;;  %454 = vmatpush3.msk.msra.mxu1 %vm50_vm0, %v38_v1  ;;  %v39_v6 = vld [vmem:[%s621_s2] sm:$0xff]  ;;  %v216_v7 = vld [vmem:[%s623_s4 + $0x8] sm:$0xff] }
   0x6   :  { %456 = vmatmul.mubr.msk.f32.vlgmr.msra.gmra.mxu1 %vm43_vm1, %v42_v3  ;;  %458 = vmatprep.subr.msk.mxu1 %vm136_vm2, %v37_v4 }
   0x7   :  { %16 = vsyncpa [#allocation4], 0  ;;  %459 = vmatpush3.msk.msra.mxu1 %vm136_vm2, %v37_v4  ;;  %v35_v8 = vld [vmem:[%s619_s0] sm:$0xff]  ;;  %464 = vmatprep.mubr.msk.f32.mxu1 %vm129_vm3, %v39_v6  ;;  %v509_v9 = vmov 0   ;;  %v40_v10 = vld [vmem:[%s621_s2 + $0x8] sm:$0xff]  ;;  %vm245_vm4 = vcmask 130048   ;;  %v336_v39 = vlaneseq }
   0x8   :  { %460 = vmatprep.subr.mxu1 %v36_v5  ;;  %485 = vset.pattern.permute.xlu0 %v509_v9  ;;  %v215_v11 = vld [vmem:[%s623_s4] sm:$0xff]  ;;  %v234_v14 = vld [vmem:[%s625_s6 + $0x8] sm:$0xff]  ;;  %v510_v29 = vmov 0.0   ;;  %vm511_vm5 = vmmov 0   ;;  %vm413_vm6 = vcmask 57344  }
   0x9   :  { %461 = vmatpush3.msra.mxu1 %v36_v5  ;;  %224 = vperm.xlu0 %485, %v216_v7   ;;  %v330_v12 = vld [vmem:[#allocation2] sm:$0x1]  ;;  %v232_v28 = vld [vmem:[%s624_s5 + $0x8] sm:$0xff]  ;;  %v337_v40 = vshrl.u32 %v336_v39, 7 }
   0xa   :  { %462 = vmatprep.subr.mxu1 %v35_v8  ;;  %486 = vset.pattern.permute.xlu1 %v509_v9  ;;  %v231_v13 = vld [vmem:[%s624_s5] sm:$0xff]  ;;  %s512_s5 = smov [#allocation3]  }
   0xb   :  { %463 = vmatpush3.msra.mxu1 %v35_v8  ;;  %471 = vmatprep.mubr.msk.f32.mxu0 %vm245_vm4, %v231_v13  ;;  %v233_v15 = vld [vmem:[%s625_s6] sm:$0xff]  ;;  %v338_v41 = vsub.s32 0, %v337_v40  ;;  %s421_s13 = sshll.u32 %s512_s5, 4  ;;  %s422_s13 = int_to_ptr.vmem [resolvable:$true] %s421_s13 }
   0xc   :  { %465 = vmatmul.mubr.msk.f32.vlgmr.msra.gmra.mxu1 %vm129_vm3, %v40_v10  ;;  %242 = vperm.xlu1 %486, %v234_v14   ;;  %v329_v38 = vld [vmem:[%s626_s7] sm:$0x1]  ;;  %s487_s14 = scalar_lea.vmem %s422_s13, 16  ;;  %s491_s7 = scalar_lea.vmem %s422_s13, 32 }
   0xd   :  { %219 = vperm.xlu0 %485, %v215_v11   ;;  %p488_p0 = scmp.ne.s32.totalorder %s422_s13, %s487_s14  ;;  %p492_p1 = scmp.lt.s32.totalorder %s422_s13, %s422_s13 }
   0xe   :  { %p493_p2 = scmp.lt.s32.totalorder %s491_s7, %s487_s14 }
  0x10   :  { %237 = vperm.xlu1 %486, %v233_v15   ;;  %p494_p3 = por %p493_p2, %p492_p1 }
  0x11   :  { %333 = vperm.xlu0 %485, %v330_v12  }
  0x12   :  { %p495_p4 = pnand %p494_p3, %p488_p0 }
  0x84   :  { %v225_v17 = vpop.permute.xlu0 %224 }
  0x87   :  { %v243_v30 = vpop.permute.xlu1 %242 }
  0x88   :  { %v220_v24 = vpop.permute.xlu0 %219 }
  0x8b   :  { %v238_v33 = vpop.permute.xlu1 %237 }
  0x8c   :  { %v334_v42 = vpop.permute.xlu0 %333 }
  0x8d   :  { %v339_v43 = vrot.slane %v334_v42, %v338_v41 }
  0xc6   :  { %v457_v16 = vpop.f32.mrf.mxu1 }
  0xc8   :  { %v120_v18 = vpop.f32.mrf.mxu1 }
  0xcc   :  { %v466_v19 = vpop.f32.mrf.mxu1 }
  0xcd   :  { %v212_v20 = vadd.f32 %v466_v19, %v457_v16 }
  0xce   :  { %v206_v21 = vpop.f32.mrf.mxu1 }
  0xcf   :  { %v207_v22 = vadd.f32 %v206_v21, %v120_v18  ;;  %v228_v23 = vadd.f32 %v225_v17, %v212_v20 }
  0xd1   :  { %v227_v25 = vadd.f32 %v220_v24, %v207_v22  ;;  %v230_v26 = vmax.f32 %v228_v23, 0.0 }
  0xd3   :  { %v229_v27 = vmax.f32 %v227_v25, 0.0  ;;  %467 = vmatprep.subr.mxu0 %v230_v26 }
  0xd4   :  { %468 = vmatpush3.msra.mxu0 %v230_v26 }
  0xd5   :  { %469 = vmatprep.subr.mxu0 %v229_v27 }
  0xd6   :  { %470 = vmatpush3.msra.mxu0 %v229_v27 }
  0xd7   :  { %472 = vmatmul.mubr.msk.f32.vlgmr.msra.gmra.mxu0 %vm245_vm4, %v232_v28  ;;  %474 = vmatprep.subr.mxu0 %v510_v29 }
  0xd8   :  { %478 = vmatprep.mubr.msk.f32.mxu0 %vm511_vm5, %v510_v29 }
 0x197   :  { %v473_v31 = vpop.f32.mrf.mxu0 }
 0x198   :  { %v324_v32 = vadd.f32 %v473_v31, %v243_v30 }
 0x199   :  { %v318_v34 = vpop.f32.mrf.mxu0 }
 0x19a   :  { %v328_v35 = vmax.f32 %v324_v32, 0.0  ;;  %v319_v36 = vadd.f32 %v318_v34, %v238_v33 }
 0x19c   :  { %v327_v37 = vmax.f32 %v319_v36, 0.0  ;;  %475 = vmatpush3.msra.mxu0 %v328_v35 }
 0x19d   :  { %476 = vmatprep.subr.mxu0 %v510_v29 }
 0x19e   :  { %477 = vmatpush3.msra.mxu0 %v327_v37 }
 0x19f   :  { %479 = vmatmul.mubr.msk.f32.vlgmr.msra.gmra.mxu0 %vm245_vm4, %v329_v38 }
 0x25f   :  { %v409_v44 = vpop.f32.mrf.mxu0 }
 0x260   :  { %v410_v45 = vadd.f32 %v409_v44, %v339_v43 }
 0x261   :  { %v480_v46 = vpop.f32.mrf.mxu0 }
 0x262   :  { %414 = vst.msk [vmem:[#allocation3] sm:$0x1] %vm413_vm6, %v410_v45 }
 0x263   :  { %498 = shalt.err (!%p495_p4)
}
 0x264   :  { %424 = dma.vmem_to_hbm [thread:$0]  %s422_s13, 16, %s628_s9, [#allocation4]  }
 0x265   :  { %507 = dma.done.wait [#allocation4], 16  }
 0x266   :  { %508 = vsyncadd [#allocation4], 4294967280 }
 0x267   :  { %428 = vsyncpa [#allocation4], 1 }

</bundles_post_ra>
